<compile_context>
chip_gen: v7x
topology: tpu7x:2x2x1
jax: 0.10.0
libtpu: 0.0.40
codegen_flags: <defaults>
</compile_context>

<pallas_src>
import math

import jax
import jax.numpy as jnp
from jax.experimental import pallas as pl
from jax.experimental.pallas import tpu as pltpu


_LANE = 128
_SUBLANE = 8


# ---------------------------------------------------------------------------
# Kernels
# ---------------------------------------------------------------------------
def _noisy_linear_train_kernel(x_ref, ein_ref, wmu_ref, wsig_ref,
                               eout_ref, beff_ref, o_ref, acc_sig_ref):
    k = pl.program_id(1)

    @pl.when(k == 0)
    def _():
        o_ref[...] = jnp.zeros_like(o_ref)
        acc_sig_ref[...] = jnp.zeros_like(acc_sig_ref)

    x = x_ref[...]                                   # [B_pad, TK]
    # mu path: accumulate straight into the resident f32 output block.
    o_ref[...] += jnp.dot(x, wmu_ref[...], preferred_element_type=jnp.float32)
    # sigma path with the factorized noise folded algebraically:
    #   x @ (W_sigma * outer(eps_out, eps_in)).T
    #     == eps_out ⊙ ((x * eps_in) @ W_sigma.T)
    acc_sig_ref[...] += jnp.dot(x * ein_ref[...], wsig_ref[...],
                                preferred_element_type=jnp.float32)

    @pl.when(k == pl.num_programs(1) - 1)
    def _():
        o_ref[...] = (o_ref[...]
                      + eout_ref[...] * acc_sig_ref[...]
                      + beff_ref[...])


def _noisy_linear_eval_kernel(x_ref, wmu_ref, bmu_ref, o_ref):
    k = pl.program_id(1)

    @pl.when(k == 0)
    def _():
        o_ref[...] = jnp.zeros_like(o_ref)

    o_ref[...] += jnp.dot(x_ref[...], wmu_ref[...],
                          preferred_element_type=jnp.float32)

    @pl.when(k == pl.num_programs(1) - 1)
    def _():
        o_ref[...] += bmu_ref[...]


# ---------------------------------------------------------------------------
# Tiling / hardware config helpers
# ---------------------------------------------------------------------------
def _round_up(x, m):
    return ((x + m - 1) // m) * m


def _cdiv(a, b):
    return -(-a // b)


def _hw_config():
    """Generation-aware tile / VMEM budget.

    v5e / v6e: 128 MiB VMEM, 1 TensorCore  -> big tiles, single-step grids.
    v7x-like:   64 MiB VMEM, 2 TensorCores -> smaller tiles, >=2 N tiles so
                the "parallel" axis can be sharded across both cores.
    Falls back to the conservative (64 MiB) budget if the query fails.
    """
    vmem = 64 * 1024 * 1024
    try:
        vmem = int(pltpu.get_tpu_info().vmem_capacity_bytes)
    except Exception:
        pass
    if vmem > 96 * 1024 * 1024:           # 128 MiB class (v4/v5e/v5p/v6e)
        return dict(vmem_limit=100 * 1024 * 1024, max_weight_elems=3 << 20,
                    tk_cap=4096, min_n_tiles=1)
    return dict(vmem_limit=48 * 1024 * 1024, max_weight_elems=1 << 20,
                tk_cap=2048, min_n_tiles=2)


def _choose_tile(dim_al, max_tile, min_tiles=1):
    """Uniform lane-aligned tiling of dim_al (a multiple of 128) minimizing
    padding overshoot, with tile <= max_tile and (best effort) >= min_tiles
    tiles.  Returns (tile, padded_dim, n_tiles)."""
    max_tile = max(_LANE, (max_tile // _LANE) * _LANE)
    nt0 = max(min_tiles, _cdiv(dim_al, max_tile))
    hi = min(nt0 + 4, dim_al // _LANE)
    best = None
    for nt in range(nt0, hi + 1):
        tile = _round_up(_cdiv(dim_al, nt), _LANE)
        if tile > max_tile:
            continue
        ntiles = _cdiv(dim_al, tile)
        padded = tile * ntiles
        cand = (padded, ntiles, tile)
        if best is None or cand < best:
            best = cand
        if padded == dim_al:
            break
    if best is None:                      # min_tiles not satisfiable
        tile = min(max_tile, dim_al)
        ntiles = _cdiv(dim_al, tile)
        best = (tile * ntiles, ntiles, tile)
    padded, ntiles, tile = best
    return tile, padded, ntiles


def _pad2(a, rows, cols):
    pr, pc = rows - a.shape[0], cols - a.shape[1]
    if pr or pc:
        a = jnp.pad(a, ((0, pr), (0, pc)))
    return a


# ---------------------------------------------------------------------------
# Parameter preparation (run once per parameter / noise update)
# ---------------------------------------------------------------------------
def prepare_noisy_linear(weight_mu, weight_sigma, eps_out, eps_in,
                         bias_mu, bias_sigma, bias_epsilon):
    """Pad + transpose parameters ONCE (amortized over all forward calls).

    weight_mu / weight_sigma: [out_features, in_features]  (PyTorch layout)
    eps_out / eps_in:         [out_features] / [in_features]
                              (weight_epsilon == outer(eps_out, eps_in))
    bias_*:                   [out_features]
    Re-run after every reset_noise() / optimizer step.
    """
    N, K = weight_mu.shape
    hw = _hw_config()
    f32 = jnp.float32

    K_al = _round_up(K, _LANE)
    N_al = _round_up(N, _LANE)

    TK, K_pad, _ = _choose_tile(K_al, hw["tk_cap"], 1)
    tn_cap = max(_LANE, (hw["max_weight_elems"] // TK) // _LANE * _LANE)
    TN, N_pad, _ = _choose_tile(N_al, tn_cap, hw["min_n_tiles"])

    # Pad + transpose to [K_pad, N_pad] once -> canonical MXU feed, no
    # per-call weight copies in the forward pass.
    w_mu_t = _pad2(jnp.asarray(weight_mu, f32).T, K_pad, N_pad)
    w_sig_t = _pad2(jnp.asarray(weight_sigma, f32).T, K_pad, N_pad)
    ein = _pad2(jnp.asarray(eps_in, f32).reshape(1, K), 1, K_pad)
    eout = _pad2(jnp.asarray(eps_out, f32).reshape(1, N), 1, N_pad)
    bmu = _pad2(jnp.asarray(bias_mu, f32).reshape(1, N), 1, N_pad)
    beff = _pad2(jnp.asarray(bias_mu + bias_sigma * bias_epsilon,
                             f32).reshape(1, N), 1, N_pad)

    return dict(N=N, K=K, TN=TN, TK=TK, N_pad=N_pad, K_pad=K_pad,
                vmem_limit=hw["vmem_limit"],
                w_mu_t=w_mu_t, w_sig_t=w_sig_t, ein=ein, eout=eout,
                bmu=bmu, beff=beff)


# ---------------------------------------------------------------------------
# Forward pass
# ---------------------------------------------------------------------------
def noisy_linear_apply(prep, x, *, training=True):
    """y = NoisyLinear.forward(x) using pre-padded parameters from
    prepare_noisy_linear()."""
    B, K = x.shape
    assert K == prep["K"], (K, prep["K"])
    TN, TK = prep["TN"], prep["TK"]
    N, N_pad, K_pad = prep["N"], prep["N_pad"], prep["K_pad"]

    B_pad = _round_up(B, _SUBLANE)
    xp = _pad2(x, B_pad, K_pad)   # zero cols contribute 0 to the contraction

    grid = (N_pad // TN, K_pad // TK)

    x_spec = pl.BlockSpec((B_pad, TK), lambda n, k: (0, k))
    w_spec = pl.BlockSpec((TK, TN), lambda n, k: (k, n))
    row_k_spec = pl.BlockSpec((1, TK), lambda n, k: (0, k))
    row_n_spec = pl.BlockSpec((1, TN), lambda n, k: (0, n))
    out_spec = pl.BlockSpec((B_pad, TN), lambda n, k: (0, n))

    compiler_params = pltpu.CompilerParams(
        dimension_semantics=("parallel", "arbitrary"),
        vmem_limit_bytes=prep["vmem_limit"])
    out_shape = jax.ShapeDtypeStruct((B_pad, N_pad), jnp.float32)

    if training:
        yp = pl.pallas_call(
            _noisy_linear_train_kernel,
            out_shape=out_shape,
            grid_spec=pltpu.PrefetchScalarGridSpec(
                num_scalar_prefetch=0,
                grid=grid,
                in_specs=[x_spec, row_k_spec, w_spec, w_spec,
                          row_n_spec, row_n_spec],
                out_specs=out_spec,
                scratch_shapes=[pltpu.VMEM((B_pad, TN), jnp.float32)]),
            compiler_params=compiler_params,
        )(xp, prep["ein"], prep["w_mu_t"], prep["w_sig_t"],
          prep["eout"], prep["beff"])
    else:
        # Eval fast path: only x, W_mu^T, b_mu are streamed.
        yp = pl.pallas_call(
            _noisy_linear_eval_kernel,
            out_shape=out_shape,
            grid_spec=pltpu.PrefetchScalarGridSpec(
                num_scalar_prefetch=0,
                grid=grid,
                in_specs=[x_spec, w_spec, row_n_spec],
                out_specs=out_spec),
            compiler_params=compiler_params,
        )(xp, prep["w_mu_t"], prep["bmu"])

    y = yp[:B, :N]
    return y if x.dtype == jnp.float32 else y.astype(x.dtype)


def noisy_linear(x, weight_mu, weight_sigma, eps_out, eps_in,
                 bias_mu, bias_sigma, bias_epsilon, *, training=True):
    """One-shot convenience wrapper (re-pads parameters every call; prefer
    prepare_noisy_linear + noisy_linear_apply inside a training loop)."""
    prep = prepare_noisy_linear(weight_mu, weight_sigma, eps_out, eps_in,
                                bias_mu, bias_sigma, bias_epsilon)
    return noisy_linear_apply(prep, x, training=training)


# ---------------------------------------------------------------------------
# Deterministic parameter / noise construction (mirrors initialize_parameters
# and reset_noise; noise is kept factorized instead of materializing outer()).
# ---------------------------------------------------------------------------
def _scale_noise(key, size):
    x = jax.random.normal(key, (size,), dtype=jnp.float32)
    return jnp.sign(x) * jnp.sqrt(jnp.abs(x))


def make_noisy_linear_params(key, in_features, out_features, sigma_init=0.5):
    k_wmu, k_bmu, k_eps_in, k_eps_out, k_beps = jax.random.split(key, 5)
    mu_range = 1.0 / math.sqrt(in_features)

    weight_mu = jax.random.uniform(
        k_wmu, (out_features, in_features), jnp.float32, -mu_range, mu_range)
    bias_mu = jax.random.uniform(
        k_bmu, (out_features,), jnp.float32, -mu_range, mu_range)
    weight_sigma = jnp.full((out_features, in_features),
                            sigma_init / math.sqrt(in_features), jnp.float32)
    bias_sigma = jnp.full((out_features,),
                          sigma_init / math.sqrt(out_features), jnp.float32)

    eps_in = _scale_noise(k_eps_in, in_features)
    eps_out = _scale_noise(k_eps_out, out_features)
    bias_epsilon = _scale_noise(k_beps, out_features)

    return dict(weight_mu=weight_mu, weight_sigma=weight_sigma,
                bias_mu=bias_mu, bias_sigma=bias_sigma,
                eps_in=eps_in, eps_out=eps_out, bias_epsilon=bias_epsilon)


# ---------------------------------------------------------------------------
# Test
# ---------------------------------------------------------------------------
def _check_case(key, B, in_features, out_features, tol):
    k_params, k_x = jax.random.split(key)
    p = make_noisy_linear_params(k_params, in_features, out_features, 0.5)
    x = jax.random.normal(k_x, (B, in_features), dtype=jnp.float32)

    prep = prepare_noisy_linear(p["weight_mu"], p["weight_sigma"],
                                p["eps_out"], p["eps_in"],
                                p["bias_mu"], p["bias_sigma"],
                                p["bias_epsilon"])
    y_train = noisy_linear_apply(prep, x, training=True)
    y_eval = noisy_linear_apply(prep, x, training=False)
    jax.block_until_ready((y_train, y_eval))

    # Plain-JAX reference (same math as the PyTorch module).
    w_eps = jnp.outer(p["eps_out"], p["eps_in"])
    w_eff = p["weight_mu"] + p["weight_sigma"] * w_eps
    b_eff = p["bias_mu"] + p["bias_sigma"] * p["bias_epsilon"]
    hi = jax.lax.Precision.HIGHEST
    ref_train = jnp.dot(x, w_eff.T, precision=hi) + b_eff
    ref_eval = jnp.dot(x, p["weight_mu"].T, precision=hi) + p["bias_mu"]

    assert y_train.shape == (B, out_features)
    assert y_eval.shape == (B, out_features)
    assert jnp.allclose(y_train, ref_train, atol=tol, rtol=tol), (
        float(jnp.max(jnp.abs(y_train - ref_train))))
    assert jnp.allclose(y_eval, ref_eval, atol=tol, rtol=tol), (
        float(jnp.max(jnp.abs(y_eval - ref_eval))))


if __name__ == "__main__":
    key = jax.random.PRNGKey(0)
    k1, k2 = jax.random.split(key)

    # Small shape matching typical DQN head usage (single grid step).
    _check_case(k1, B=8, in_features=32, out_features=64, tol=5e-3)
    # Non-aligned shape exercising minimal-overshoot padding / tiling.
    _check_case(k2, B=5, in_features=640, out_features=300, tol=5e-3)

    print("KERNEL_OK")
</pallas_src>

<mosaic_0001>
module attributes {stable_mosaic.version = 11 : i64} {
  func.func @_noisy_linear_train_kernel(%arg0: i32, %arg1: i32, %arg2: memref<8x128xf32, #tpu.memory_space<vmem>>, %arg3: memref<1x128xf32, #tpu.memory_space<vmem>>, %arg4: memref<128x128xf32, #tpu.memory_space<vmem>>, %arg5: memref<128x128xf32, #tpu.memory_space<vmem>>, %arg6: memref<1x128xf32, #tpu.memory_space<vmem>>, %arg7: memref<1x128xf32, #tpu.memory_space<vmem>>, %arg8: memref<8x128xf32, #tpu.memory_space<vmem>>, %arg9: memref<8x128xf32, #tpu.memory_space<vmem>>) attributes {dimension_semantics = [#tpu.dimension_semantics<parallel>, #tpu.dimension_semantics<arbitrary>], iteration_bounds = array<i64: 1, 1>, scalar_prefetch = 0 : i64, scratch_operands = 1 : i64, tpu.core_type = #tpu.core_type<tc>, window_params = [{transform_indices = @transform_0, window_bounds = array<i64: 8, 128>}, {transform_indices = @transform_1, window_bounds = array<i64: 1, 128>}, {transform_indices = @transform_2, window_bounds = array<i64: 128, 128>}, {transform_indices = @transform_3, window_bounds = array<i64: 128, 128>}, {transform_indices = @transform_4, window_bounds = array<i64: 1, 128>}, {transform_indices = @transform_5, window_bounds = array<i64: 1, 128>}, {transform_indices = @transform_6, window_bounds = array<i64: 8, 128>}]} {
    %c0_i32 = arith.constant 0 : i32
    %0 = arith.cmpi eq, %arg1, %c0_i32 : i32
    %1 = arith.extui %0 : i1 to i32
    %c0_i32_0 = arith.constant 0 : i32
    %2 = arith.cmpi ne, %1, %c0_i32_0 : i32
    scf.if %2 {
      %cst_19 = arith.constant 0.000000e+00 : f32
      %20 = vector.broadcast %cst_19 : f32 to vector<8x128xf32>
      %c0_20 = arith.constant 0 : index
      %c0_21 = arith.constant 0 : index
      %21 = vector.load %arg8[%c0_20, %c0_21] : memref<8x128xf32, #tpu.memory_space<vmem>>, vector<8x128xf32>
      tpu.vector_store %arg8[%c0_20, %c0_21], %20 {strides = array<i32>} : memref<8x128xf32, #tpu.memory_space<vmem>>, vector<8x128xf32>,
      %cst_22 = arith.constant 0.000000e+00 : f32
      %22 = vector.broadcast %cst_22 : f32 to vector<8x128xf32>
      %c0_23 = arith.constant 0 : index
      %c0_24 = arith.constant 0 : index
      %23 = vector.load %arg9[%c0_23, %c0_24] : memref<8x128xf32, #tpu.memory_space<vmem>>, vector<8x128xf32>
      tpu.vector_store %arg9[%c0_23, %c0_24], %22 {strides = array<i32>} : memref<8x128xf32, #tpu.memory_space<vmem>>, vector<8x128xf32>,
    } else {
    }
    %c0 = arith.constant 0 : index
    %c0_1 = arith.constant 0 : index
    %3 = vector.load %arg2[%c0, %c0_1] : memref<8x128xf32, #tpu.memory_space<vmem>>, vector<8x128xf32>
    %c0_2 = arith.constant 0 : index
    %c0_3 = arith.constant 0 : index
    %4 = vector.load %arg8[%c0_2, %c0_3] : memref<8x128xf32, #tpu.memory_space<vmem>>, vector<8x128xf32>
    %c0_4 = arith.constant 0 : index
    %c0_5 = arith.constant 0 : index
    %5 = vector.load %arg4[%c0_4, %c0_5] : memref<128x128xf32, #tpu.memory_space<vmem>>, vector<128x128xf32>
    %cst = arith.constant dense<0.000000e+00> : vector<8x128xf32>
    %6 = tpu.matmul %3, %5, %cst {dimension_numbers = #tpu.dot_dimension_numbers<[1], [0], [0], [1], [0, 0, 1, 1], [], []>} : vector<8x128xf32>, vector<128x128xf32>, vector<8x128xf32> -> vector<8x128xf32>
    %7 = arith.addf %4, %6 : vector<8x128xf32>
    %c0_6 = arith.constant 0 : index
    %c0_7 = arith.constant 0 : index
    %8 = vector.load %arg8[%c0_6, %c0_7] : memref<8x128xf32, #tpu.memory_space<vmem>>, vector<8x128xf32>
    tpu.vector_store %arg8[%c0_6, %c0_7], %7 {strides = array<i32>} : memref<8x128xf32, #tpu.memory_space<vmem>>, vector<8x128xf32>,
    %c0_8 = arith.constant 0 : index
    %c0_9 = arith.constant 0 : index
    %9 = vector.load %arg9[%c0_8, %c0_9] : memref<8x128xf32, #tpu.memory_space<vmem>>, vector<8x128xf32>
    %c0_10 = arith.constant 0 : index
    %c0_11 = arith.constant 0 : index
    %10 = vector.load %arg3[%c0_10, %c0_11] : memref<1x128xf32, #tpu.memory_space<vmem>>, vector<1x128xf32>
    %11 = vector.broadcast %10 : vector<1x128xf32> to vector<8x128xf32>
    %12 = arith.mulf %3, %11 : vector<8x128xf32>
    %c0_12 = arith.constant 0 : index
    %c0_13 = arith.constant 0 : index
    %13 = vector.load %arg5[%c0_12, %c0_13] : memref<128x128xf32, #tpu.memory_space<vmem>>, vector<128x128xf32>
    %cst_14 = arith.constant dense<0.000000e+00> : vector<8x128xf32>
    %14 = tpu.matmul %12, %13, %cst_14 {dimension_numbers = #tpu.dot_dimension_numbers<[1], [0], [0], [1], [0, 0, 1, 1], [], []>} : vector<8x128xf32>, vector<128x128xf32>, vector<8x128xf32> -> vector<8x128xf32>
    %15 = arith.addf %9, %14 : vector<8x128xf32>
    %c0_15 = arith.constant 0 : index
    %c0_16 = arith.constant 0 : index
    %16 = vector.load %arg9[%c0_15, %c0_16] : memref<8x128xf32, #tpu.memory_space<vmem>>, vector<8x128xf32>
    tpu.vector_store %arg9[%c0_15, %c0_16], %15 {strides = array<i32>} : memref<8x128xf32, #tpu.memory_space<vmem>>, vector<8x128xf32>,
    %c0_i32_17 = arith.constant 0 : i32
    %17 = arith.cmpi eq, %arg1, %c0_i32_17 : i32
    %18 = arith.extui %17 : i1 to i32
    %c0_i32_18 = arith.constant 0 : i32
    %19 = arith.cmpi ne, %18, %c0_i32_18 : i32
    scf.if %19 {
      %c0_19 = arith.constant 0 : index
      %c0_20 = arith.constant 0 : index
      %20 = vector.load %arg8[%c0_19, %c0_20] : memref<8x128xf32, #tpu.memory_space<vmem>>, vector<8x128xf32>
      %c0_21 = arith.constant 0 : index
      %c0_22 = arith.constant 0 : index
      %21 = vector.load %arg6[%c0_21, %c0_22] : memref<1x128xf32, #tpu.memory_space<vmem>>, vector<1x128xf32>
      %c0_23 = arith.constant 0 : index
      %c0_24 = arith.constant 0 : index
      %22 = vector.load %arg9[%c0_23, %c0_24] : memref<8x128xf32, #tpu.memory_space<vmem>>, vector<8x128xf32>
      %23 = vector.broadcast %21 : vector<1x128xf32> to vector<8x128xf32>
      %24 = arith.mulf %23, %22 : vector<8x128xf32>
      %25 = arith.addf %20, %24 : vector<8x128xf32>
      %c0_25 = arith.constant 0 : index
      %c0_26 = arith.constant 0 : index
      %26 = vector.load %arg7[%c0_25, %c0_26] : memref<1x128xf32, #tpu.memory_space<vmem>>, vector<1x128xf32>
      %27 = vector.broadcast %26 : vector<1x128xf32> to vector<8x128xf32>
      %28 = arith.addf %25, %27 : vector<8x128xf32>
      %c0_27 = arith.constant 0 : index
      %c0_28 = arith.constant 0 : index
      %29 = vector.load %arg8[%c0_27, %c0_28] : memref<8x128xf32, #tpu.memory_space<vmem>>, vector<8x128xf32>
      tpu.vector_store %arg8[%c0_27, %c0_28], %28 {strides = array<i32>} : memref<8x128xf32, #tpu.memory_space<vmem>>, vector<8x128xf32>,
    } else {
    }
    return
  }
  func.func @transform_0(%arg0: i32, %arg1: i32) -> (i32, i32) {
    %c0_i32 = arith.constant 0 : i32
    %c0_i32_0 = arith.constant 0 : i32
    return %c0_i32, %arg1 : i32, i32
  }
  func.func @transform_1(%arg0: i32, %arg1: i32) -> (i32, i32) {
    %c0_i32 = arith.constant 0 : i32
    %c0_i32_0 = arith.constant 0 : i32
    return %c0_i32, %arg1 : i32, i32
  }
  func.func @transform_2(%arg0: i32, %arg1: i32) -> (i32, i32) {
    %c0_i32 = arith.constant 0 : i32
    return %arg1, %arg0 : i32, i32
  }
  func.func @transform_3(%arg0: i32, %arg1: i32) -> (i32, i32) {
    %c0_i32 = arith.constant 0 : i32
    return %arg1, %arg0 : i32, i32
  }
  func.func @transform_4(%arg0: i32, %arg1: i32) -> (i32, i32) {
    %c0_i32 = arith.constant 0 : i32
    %c0_i32_0 = arith.constant 0 : i32
    return %c0_i32, %arg0 : i32, i32
  }
  func.func @transform_5(%arg0: i32, %arg1: i32) -> (i32, i32) {
    %c0_i32 = arith.constant 0 : i32
    %c0_i32_0 = arith.constant 0 : i32
    return %c0_i32, %arg0 : i32, i32
  }
  func.func @transform_6(%arg0: i32, %arg1: i32) -> (i32, i32) {
    %c0_i32 = arith.constant 0 : i32
    %c0_i32_0 = arith.constant 0 : i32
    return %c0_i32, %arg0 : i32, i32
  }
}

</mosaic_0001>

<bundles_post_ra>
// kernel: tpu_custom_call.1
= control target key start
LH: loop header
LB: loop body
LE: loop exit
PB: predicated region body
PF: predicated region fallthrough
CT: control target
= control target key end

     0   :  { %11 = vsyncpa [#allocation4], 0  ;;  %s676_s0 = inlined_call_operand.hbm [shape: f32[8,128], index: 0, kind: input, shape index: {}]   ;;  %s677_s1 = inlined_call_operand.vmem [shape: f32[1,128], index: 1, kind: input, shape index: {}]   ;;  %s678_s2 = inlined_call_operand.hbm [shape: f32[128,128], index: 2, kind: input, shape index: {}]   ;;  %s679_s3 = inlined_call_operand.hbm [shape: f32[128,128], index: 3, kind: input, shape index: {}]   ;;  %s680_s4 = inlined_call_operand.vmem [shape: f32[1,128], index: 4, kind: input, shape index: {}]   ;;  %s681_s5 = inlined_call_operand.vmem [shape: f32[1,128], index: 5, kind: input, shape index: {}]   ;;  %s682_s6 = inlined_call_operand.hbm [shape: f32[8,128], index: 6, kind: output, shape index: {}]  }
   0x1   :  { %12 = vsyncpa [#allocation7], 0 }
   0x2   :  { %13 = vsyncpa [#allocation5], 0  ;;  %s553_s21 = smov [#allocation6]   ;;  %s459_s25 = scalar_lea.hbm %s678_s2, 2048 }
   0x3   :  { %s31_s22 = sshll.u32 %s553_s21, 4  ;;  %p460_p0 = scmp.ne.s32.totalorder %s678_s2, %s459_s25  ;;  %s32_s22 = int_to_ptr.vmem [resolvable:$true] %s31_s22 }
   0x4   :  { %p463_p1 = scmp.lt.u32.totalorder %s459_s25, %s678_s2 }
   0x6   :  { %p465_p2 = pnand %p463_p1, %p460_p0 }
   0x8   :  { %468 = shalt.err (!%p465_p2)
}
   0x9   :  { %s469_s30 = scalar_lea.vmem %s32_s22, 2048  ;;  %p474_p4 = scmp.lt.s32.totalorder %s32_s22, %s32_s22 }
   0xa   :  { %p470_p3 = scmp.ne.s32.totalorder %s32_s22, %s469_s30  ;;  %p475_p5 = scmp.lt.s32.totalorder %s469_s30, %s469_s30 }
   0xc   :  { %p476_p6 = por %p475_p5, %p474_p4 }
   0xe   :  { %p477_p7 = pnand %p476_p6, %p470_p3 }
  0x10   :  { %480 = shalt.err (!%p477_p7)
}
  0x11   :  { %s554_s7 = smov 128   ;;  %s555_s8 = smov 8  }
  0x12   :  { %37 = dma.hbm_to_vmem [thread:$0]  %s678_s2, 2048, %s32_s22, [#allocation7], %s554_s7, %s554_s7, %s555_s8  }
  0x13   :  { %s556_s11 = smov [#allocation3]   ;;  %s557_s13 = smov [#allocation8]  }
  0x14   :  { %s20_s12 = sshll.u32 %s556_s11, 4  ;;  %s43_s14 = sshll.u32 %s557_s13, 4  ;;  %s21_s12 = int_to_ptr.vmem [resolvable:$true] %s20_s12  ;;  %s44_s14 = int_to_ptr.vmem [resolvable:$true] %s43_s14 }
  0x15   :  { %s481_s17 = scalar_lea.hbm %s676_s0, 128 }
  0x16   :  { %p482_p8 = scmp.ne.s32.totalorder %s676_s0, %s481_s17  ;;  %p485_p9 = scmp.lt.u32.totalorder %s481_s17, %s676_s0 }
  0x18   :  { %p487_p10 = pnand %p485_p9, %p482_p8 }
  0x1a   :  { %490 = shalt.err (!%p487_p10)
}
  0x1b   :  { %s491_s2 = scalar_lea.vmem %s21_s12, 128  ;;  %p496_p12 = scmp.lt.s32.totalorder %s21_s12, %s21_s12 }
  0x1c   :  { %p492_p11 = scmp.ne.s32.totalorder %s21_s12, %s491_s2  ;;  %p497_p13 = scmp.lt.s32.totalorder %s491_s2, %s491_s2 }
  0x1e   :  { %p498_p0 = por %p497_p13, %p496_p12 }
  0x20   :  { %p499_p1 = pnand %p498_p0, %p492_p11 }
  0x22   :  { %502 = shalt.err (!%p499_p1)
}
  0x23   :  { %23 = dma.hbm_to_vmem [thread:$0]  %s676_s0, 128, %s21_s12, [#allocation4]  }
  0x24   :  { %s503_s26 = scalar_lea.hbm %s679_s3, 2048 }
  0x25   :  { %p504_p2 = scmp.ne.s32.totalorder %s679_s3, %s503_s26  ;;  %p507_p3 = scmp.lt.u32.totalorder %s503_s26, %s679_s3 }
  0x27   :  { %p509_p4 = pnand %p507_p3, %p504_p2 }
  0x29   :  { %512 = shalt.err (!%p509_p4)
}
  0x2a   :  { %s513_s9 = scalar_lea.vmem %s44_s14, 2048  ;;  %p518_p6 = scmp.lt.s32.totalorder %s44_s14, %s44_s14 }
  0x2b   :  { %p514_p5 = scmp.ne.s32.totalorder %s44_s14, %s513_s9  ;;  %p519_p7 = scmp.lt.s32.totalorder %s513_s9, %s513_s9 }
  0x2d   :  { %p520_p8 = por %p519_p7, %p518_p6 }
  0x2f   :  { %p521_p9 = pnand %p520_p8, %p514_p5 }
  0x31   :  { %524 = shalt.err (!%p521_p9)
}
  0x32   :  { %49 = dma.hbm_to_vmem [thread:$0]  %s679_s3, 2048, %s44_s14, [#allocation7], %s554_s7, %s554_s7, %s555_s8  }
  0x33   :  { %547 = dma.done.wait [#allocation4], 128  }
  0x34   :  { %548 = vsyncadd [#allocation4], 4294967168 }
  0x35   :  { %549 = dma.done.wait [#allocation7], 4096  }
  0x36   :  { %550 = vsyncadd [#allocation7], 4294963200  ;;  %v558_v0 = vmov 0.0|0.0   ;;  %vm559_vm0 = vmmov 0   ;;  %v560_v1 = vmov 0.0   ;;  %v71_v2 = vld [vmem:[#allocation6] sm:$0xff] }
  0x37   :  { %402 = vmatprep.subr.bf16.mxu0 %v558_v0  ;;  %426 = vmatprep.subr.bf16.mxu1 %v558_v0  ;;  %v72_v3 = vld [vmem:[#allocation6 + $0x8] sm:$0xff]  ;;  %v73_v4 = vld [vmem:[#allocation6 + $0x10] sm:$0xff]  ;;  %v74_v6 = vld [vmem:[#allocation6 + $0x18] sm:$0xff]  ;;  %s561_s13 = smov [#allocation9]  }
  0x38   :  { %364 = vmatprep.mubr.msk.f32.mxu0 %vm559_vm0, %v560_v1  ;;  %399 = vmatprep.mubr.msk.f32.mxu1 %vm559_vm0, %v560_v1  ;;  %v403_v5 = vpack.c.bf16 %v72_v3, %v71_v2  ;;  %v168_v7 = vld [vmem:[#allocation8] sm:$0xff]  ;;  %v169_v8 = vld [vmem:[#allocation8 + $0x8] sm:$0xff]  ;;  %v170_v10 = vld [vmem:[#allocation8 + $0x10] sm:$0xff]  ;;  %v406_v11 = vpack.c.bf16 %v74_v6, %v73_v4  ;;  %s285_s14 = sshll.u32 %s561_s13, 4  ;;  %s286_s14 = int_to_ptr.vmem [resolvable:$true] %s285_s14 }
  0x39   :  { %v427_v9 = vpack.c.bf16 %v169_v8, %v168_v7  ;;  %v171_v12 = vld [vmem:[#allocation8 + $0x18] sm:$0xff]  ;;  %v75_v13 = vld [vmem:[#allocation6 + $0x20] sm:$0xff]  ;;  %v76_v14 = vld [vmem:[#allocation6 + $0x28] sm:$0xff]  ;;  %s525_s15 = scalar_lea.vmem %s286_s14, 128  ;;  %p530_p11 = scmp.lt.s32.totalorder %s286_s14, %s286_s14 }
  0x3a   :  { %404 = vmatpush3.bf16.msra.mxu0 %v403_v5  ;;  %v430_v15 = vpack.c.bf16 %v171_v12, %v170_v10  ;;  %v172_v16 = vld [vmem:[#allocation8 + $0x20] sm:$0xff]  ;;  %v173_v17 = vld [vmem:[#allocation8 + $0x28] sm:$0xff]  ;;  %v409_v18 = vpack.c.bf16 %v76_v14, %v75_v13  ;;  %v77_v19 = vld [vmem:[#allocation6 + $0x30] sm:$0xff]  ;;  %p526_p10 = scmp.ne.s32.totalorder %s286_s14, %s525_s15  ;;  %p531_p12 = scmp.lt.s32.totalorder %s525_s15, %s525_s15 }
  0x3b   :  { %405 = vmatprep.subr.bf16.mxu0 %v558_v0  ;;  %428 = vmatpush3.bf16.msra.mxu1 %v427_v9  ;;  %v78_v20 = vld [vmem:[#allocation6 + $0x38] sm:$0xff]  ;;  %v433_v21 = vpack.c.bf16 %v173_v17, %v172_v16  ;;  %v174_v22 = vld [vmem:[#allocation8 + $0x30] sm:$0xff]  ;;  %v79_v25 = vld [vmem:[#allocation6 + $0x40] sm:$0xff] }
  0x3c   :  { %429 = vmatprep.subr.bf16.mxu1 %v558_v0  ;;  %v175_v23 = vld [vmem:[#allocation8 + $0x38] sm:$0xff]  ;;  %v412_v24 = vpack.c.bf16 %v78_v20, %v77_v19  ;;  %v80_v26 = vld [vmem:[#allocation6 + $0x48] sm:$0xff]  ;;  %v176_v28 = vld [vmem:[#allocation8 + $0x40] sm:$0xff]  ;;  %p532_p13 = por %p531_p12, %p530_p11 }
  0x3d   :  { %v436_v27 = vpack.c.bf16 %v175_v23, %v174_v22  ;;  %v177_v29 = vld [vmem:[#allocation8 + $0x48] sm:$0xff]  ;;  %v415_v30 = vpack.c.bf16 %v80_v26, %v79_v25  ;;  %v81_v31 = vld [vmem:[#allocation6 + $0x50] sm:$0xff]  ;;  %v82_v32 = vld [vmem:[#allocation6 + $0x58] sm:$0xff] }
  0x3e   :  { %407 = vmatpush3.bf16.msra.mxu0 %v406_v11  ;;  %v439_v33 = vpack.c.bf16 %v177_v29, %v176_v28  ;;  %v178_v34 = vld [vmem:[#allocation8 + $0x50] sm:$0xff]  ;;  %v179_v35 = vld [vmem:[#allocation8 + $0x58] sm:$0xff]  ;;  %v418_v36 = vpack.c.bf16 %v82_v32, %v81_v31  ;;  %v83_v37 = vld [vmem:[#allocation6 + $0x60] sm:$0xff]  ;;  %p533_p0 = pnand %p532_p13, %p526_p10 }
  0x3f   :  { %408 = vmatprep.subr.bf16.mxu0 %v558_v0  ;;  %431 = vmatpush3.bf16.msra.mxu1 %v430_v15  ;;  %v84_v38 = vld [vmem:[#allocation6 + $0x68] sm:$0xff]  ;;  %v442_v39 = vpack.c.bf16 %v179_v35, %v178_v34  ;;  %v180_v40 = vld [vmem:[#allocation8 + $0x60] sm:$0xff]  ;;  %v85_v43 = vld [vmem:[#allocation6 + $0x70] sm:$0xff] }
  0x40   :  { %432 = vmatprep.subr.bf16.mxu1 %v558_v0  ;;  %v181_v41 = vld [vmem:[#allocation8 + $0x68] sm:$0xff]  ;;  %v421_v42 = vpack.c.bf16 %v84_v38, %v83_v37  ;;  %v86_v44 = vld [vmem:[#allocation6 + $0x78] sm:$0xff]  ;;  %v182_v46 = vld [vmem:[#allocation8 + $0x70] sm:$0xff] }
  0x41   :  { %v445_v45 = vpack.c.bf16 %v181_v41, %v180_v40  ;;  %v183_v47 = vld [vmem:[#allocation8 + $0x78] sm:$0xff]  ;;  %v424_v48 = vpack.c.bf16 %v86_v44, %v85_v43 }
  0x42   :  { %410 = vmatpush3.bf16.msra.mxu0 %v409_v18  ;;  %v69_v49 = vld [vmem:[#allocation3] sm:$0xff]  ;;  %v448_v51 = vpack.c.bf16 %v183_v47, %v182_v46 }
  0x43   :  { %411 = vmatprep.subr.bf16.mxu0 %v558_v0  ;;  %434 = vmatpush3.bf16.msra.mxu1 %v433_v21  ;;  %v295_v50 = vld [vmem:[%s677_s1] ss:$0 sm:$0xff] }
  0x44   :  { %435 = vmatprep.subr.bf16.mxu1 %v558_v0  ;;  %v167_v52 = vmul.f32 %v295_v50, %v69_v49  ;;  %v296_v53 = vld [vmem:[%s680_s4] ss:$0 sm:$0xff] }
  0x45   :  { %v297_v59 = vld [vmem:[%s681_s5] ss:$0 sm:$0xff] }
  0x46   :  { %413 = vmatpush3.bf16.msra.mxu0 %v412_v24 }
  0x47   :  { %414 = vmatprep.subr.bf16.mxu0 %v558_v0  ;;  %437 = vmatpush3.bf16.msra.mxu1 %v436_v27 }
  0x48   :  { %438 = vmatprep.subr.bf16.mxu1 %v558_v0 }
  0x4a   :  { %416 = vmatpush3.bf16.msra.mxu0 %v415_v30 }
  0x4b   :  { %417 = vmatprep.subr.bf16.mxu0 %v558_v0  ;;  %440 = vmatpush3.bf16.msra.mxu1 %v439_v33 }
  0x4c   :  { %441 = vmatprep.subr.bf16.mxu1 %v558_v0 }
  0x4e   :  { %419 = vmatpush3.bf16.msra.mxu0 %v418_v36 }
  0x4f   :  { %420 = vmatprep.subr.bf16.mxu0 %v558_v0  ;;  %443 = vmatpush3.bf16.msra.mxu1 %v442_v39 }
  0x50   :  { %444 = vmatprep.subr.bf16.mxu1 %v558_v0 }
  0x52   :  { %422 = vmatpush3.bf16.msra.mxu0 %v421_v42 }
  0x53   :  { %423 = vmatprep.subr.bf16.mxu0 %v558_v0  ;;  %446 = vmatpush3.bf16.msra.mxu1 %v445_v45 }
  0x54   :  { %447 = vmatprep.subr.bf16.mxu1 %v558_v0 }
  0x56   :  { %425 = vmatpush3.bf16.msra.mxu0 %v424_v48 }
  0x57   :  { %449 = vmatpush3.bf16.msra.mxu1 %v448_v51 }
  0x59   :  { %365 = vmatmul.mubr.f32.vlgmr.msra.gmra.mrb[0].mxu0 %v69_v49 }
  0x5a   :  { %400 = vmatmul.mubr.f32.vlgmr.msra.gmra.mrb[0].mxu1 %v167_v52 }
 0x12c   :  { %v153_v54 = vpop.f32.mrb[0].mxu0 }
 0x12d   :  { %v366_v55 = vpop.f32.mrb[1].mxu0  ;;  %v250_v56 = vpop.f32.mrb[0].mxu1 }
 0x12e   :  { %v268_v57 = vmul.f32 %v296_v53, %v250_v56  ;;  %v401_v58 = vpop.f32.mrb[1].mxu1 }
 0x130   :  { %v269_v60 = vadd.f32 %v268_v57, %v153_v54 }
 0x132   :  { %v277_v61 = vadd.f32 %v297_v59, %v269_v60 }
 0x134   :  { %278 = vst [vmem:[#allocation9] sm:$0xff] %v277_v61 }
 0x135   :  { %536 = shalt.err (!%p533_p0)
}
 0x136   :  { %s537_s17 = scalar_lea.hbm %s682_s6, 128 }
 0x137   :  { %p538_p1 = scmp.ne.s32.totalorder %s682_s6, %s537_s17  ;;  %p541_p2 = scmp.lt.u32.totalorder %s537_s17, %s682_s6 }
 0x139   :  { %p543_p3 = pnand %p541_p2, %p538_p1 }
 0x13b   :  { %546 = shalt.err (!%p543_p3)
}
 0x13c   :  { %288 = dma.vmem_to_hbm [thread:$0]  %s286_s14, 128, %s682_s6, [#allocation5]  }
 0x13d   :  { %551 = dma.done.wait [#allocation5], 128  }
 0x13e   :  { %552 = vsyncadd [#allocation5], 4294967168 }
 0x13f   :  { %292 = vsyncpa [#allocation4], 1 }
 0x140   :  { %293 = vsyncpa [#allocation7], 1 }
 0x141   :  { %294 = vsyncpa [#allocation5], 1 }

</bundles_post_ra>
